<compile_context>
chip_gen: v5e
topology: v5e:2x2
jax: 0.10.0
libtpu: 0.0.40
codegen_flags: <defaults>
</compile_context>

<pallas_src>
import jax
import jax.numpy as jnp
from jax.experimental import pallas as pl
from jax.experimental.pallas import tpu as pltpu


def _fold_lanes(x, nj, de, op):
    """Reduce (rows, nj*de) over j (lane index l = j*de + d) -> (rows, de).

    Pairwise halving: early steps are elementwise ops on whole, 128-aligned
    vreg slices (VPU); only the last few steps need sub-vreg lane offsets
    (cheap XLU rotates).  Handles any nj via an odd-element carry.
    """
    carry = None
    while nj > 1:
        if nj % 2 == 1:
            last = x[:, (nj - 1) * de:]
            carry = last if carry is None else op(carry, last)
            nj -= 1
            x = x[:, : nj * de]
        half = nj // 2
        x = op(x[:, : half * de], x[:, half * de:])
        nj = half
    if carry is not None:
        x = op(x, carry)
    return x  # (rows, de)


def _etox_kernel(e_ref, mask_ref, inv_ref, sel_ref, w_ref, b_ref, out_ref):
    # e_ref:    (tb, tn, n*de)   E batch/row tile, reduced axis j on lanes (l = j*de + d)
    # mask_ref: (tb, 1, n*de)    per-batch edge mask, repeated de times per j
    # inv_ref:  (tb, 1, 1)       per-batch 1 / sum(mask)   (precomputed in wrapper)
    # sel_ref:  (n*de, de)       constant selector: sel[j*de+d, d'] = (d == d')
    # w_ref:    (4, de, dx_pad)  [W^T blocks for mean, min, max, std]
    # b_ref:    (1, dx_pad)
    # out_ref:  (tb, tn, dx_pad)
    tb = e_ref.shape[0]
    nde = e_ref.shape[2]
    de = w_ref.shape[1]
    nj = nde // de

    sel = sel_ref[...]
    bias = b_ref[...]
    w_mean, w_min, w_max, w_std = w_ref[0], w_ref[1], w_ref[2], w_ref[3]

    # Static unroll over the batch tile; each slab is an independent (tn, n*de)
    # problem.  (Per-E-value reuse across its 5 consumers is left to the
    # compiler; a sublane-strip fusion would only matter once HBM stops being
    # the limit, i.e. v7x.)
    for t in range(tb):
        E = e_ref[t].astype(jnp.float32)          # (tn, n*de); no-op cast for f32 E
        maskb = mask_ref[t]                       # (1, n*de)
        inv = inv_ref[t]                          # (1, 1) = 1/count

        # Sums over j -> MXU matmuls against the selector (MXU is idle otherwise).
        Em = E * maskb                                                   # masked E
        s1 = jnp.dot(E, sel, preferred_element_type=jnp.float32)        # unmasked sum   (tn, de)
        s1m = jnp.dot(Em, sel, preferred_element_type=jnp.float32)      # masked 1st moment
        s2m = jnp.dot(E * Em, sel, preferred_element_type=jnp.float32)  # masked 2nd moment

        m = s1 * inv                                  # mean (module: unmasked sum / count)
        # sum((E - m)^2 * mask) / count expanded exactly (valid for E != 0 off-mask):
        var = s2m * inv - 2.0 * m * (s1m * inv) + m * m

        # Masked min/max with the module's +-1e5 sentinel; penalty is only (1, n*de).
        pen = 100000.0 * (1.0 - maskb)
        mi = _fold_lanes(E + pen, nj, de, jnp.minimum)                   # (tn, de)
        ma = _fold_lanes(E - pen, nj, de, jnp.maximum)                   # (tn, de)

        # Linear layer: four small K=de MXU matmuls instead of a lane-axis concat.
        out = jnp.dot(m, w_mean, preferred_element_type=jnp.float32)
        out = out + jnp.dot(mi, w_min, preferred_element_type=jnp.float32)
        out = out + jnp.dot(ma, w_max, preferred_element_type=jnp.float32)
        out = out + jnp.dot(var, w_std, preferred_element_type=jnp.float32)
        out = out + bias                                                  # (1, dx_pad) row broadcast
        out_ref[t] = out.astype(out_ref.dtype)


def _block_bytes(tb, tn, nde, esize, dx_pad):
    # Double-buffered per-grid-step streaming blocks (E in, out, mask row).
    e_b = tn * nde * esize
    o_b = tn * dx_pad * 4
    m_b = 8 * nde * 4
    return 2 * tb * (e_b + o_b + m_b)


def _pick_tiles(bs, n, nde, esize, dx_pad, block_budget):
    def fits(tb, tn):
        return _block_bytes(tb, tn, nde, esize, dx_pad) <= block_budget

    # Row tile: full n if it fits (also required when n < 8 by the (8,128)
    # rule), otherwise the largest multiple of 8 that fits the budget.
    tn = n
    if n > 8 and not fits(1, n):
        tn = max(8, (n // 2) // 8 * 8)
        while tn > 8 and not fits(1, tn):
            tn = max(8, (tn // 2) // 8 * 8)

    # Batch tile: largest divisor of bs (capped at 8 to bound kernel unrolling)
    # that still fits the budget.
    tb = 1
    for cand in range(min(bs, 8), 0, -1):
        if bs % cand == 0 and fits(cand, tn):
            tb = cand
            break

    # Megacore (v7x: 2 TensorCores share the 'parallel' grid axes): keep at
    # least 2 grid steps whenever the problem size allows it.
    if (bs // tb) * pl.cdiv(n, tn) < 2:
        if bs >= 2 and bs // tb < 2:
            for cand in range(min(bs // 2, 8), 0, -1):
                if bs % cand == 0:
                    tb = cand
                    break
        elif bs == 1 and n >= 16 and tn == n:
            tn = max(8, ((n + 1) // 2 + 7) // 8 * 8)
    return tb, tn


def etox_pallas(E, e_mask2, w, b):
    """EtoX forward.

    E:       (bs, n, n, de)  edge features (f32 or bf16)
    e_mask2: (bs, 1, n, 1)   edge mask (same convention as the PyTorch module)
    w:       (dx, 4*de)      nn.Linear weight (PyTorch layout)
    b:       (dx,)           nn.Linear bias
    returns: (bs, n, dx) f32

    Note: an all-zero mask row yields inf/NaN (1/0), exactly like the module.
    """
    bs, n, n2, de = E.shape
    assert n2 == n, "E must be (bs, n, n, de)"
    dx = w.shape[0]
    assert w.shape == (dx, 4 * de)
    nde = n * de

    # Free view (bitcast): merge the two contiguous minor dims so the reduced
    # axis j sits lane-dense.  No standalone HBM transpose pass over E.
    Ef = E.reshape(bs, n, nde)

    mask_n = e_mask2.reshape(bs, n).astype(jnp.float32)                  # (bs, n)
    maskflat = jnp.repeat(mask_n, de, axis=-1).reshape(bs, 1, nde)       # (bs, 1, n*de)
    inv_cnt = (1.0 / jnp.sum(mask_n, axis=-1)).reshape(bs, 1, 1)         # (bs, 1, 1)

    # Constant selector: turns "sum over j, keep d" into one MXU matmul.
    sel = jnp.tile(jnp.eye(de, dtype=jnp.float32), (n, 1))               # (n*de, de)

    # Pad dx to a lane multiple so output stores are unmasked / lane-dense.
    dx_pad = ((dx + 127) // 128) * 128
    w4 = jnp.pad(w.T.astype(jnp.float32).reshape(4, de, dx),
                 ((0, 0), (0, 0), (0, dx_pad - dx)))                     # (4, de, dx_pad)
    b2 = jnp.pad(b.astype(jnp.float32), (0, dx_pad - dx)).reshape(1, dx_pad)

    # --- VMEM-budget-driven tiling (per chip generation) --------------------
    esize = jnp.dtype(E.dtype).itemsize
    vmem_cap = 128 << 20
    try:
        cap = int(getattr(pltpu.get_tpu_info(), "vmem_capacity_bytes", 0))
        if cap > 0:
            vmem_cap = cap
    except Exception:
        pass
    total_budget = min(64 << 20, max(vmem_cap // 2, 8 << 20))   # v7x: 32 MiB, v5e/v6e: 64 MiB
    fixed = 2 * 4 * (nde * 128 + 4 * 8 * dx_pad + 8 * dx_pad)   # sel + w4 + bias (padded, x2)
    block_budget = max(total_budget - fixed - (2 << 20), 2 << 20)
    tb, tn = _pick_tiles(bs, n, nde, esize, dx_pad, block_budget)

    est = fixed + _block_bytes(tb, tn, nde, esize, dx_pad)
    vmem_limit = int(min(vmem_cap * 3 // 4, max(2 * est + (8 << 20), 32 << 20)))

    grid = (bs // tb, pl.cdiv(n, tn))

    grid_spec = pltpu.PrefetchScalarGridSpec(
        num_scalar_prefetch=0,
        grid=grid,
        in_specs=[
            pl.BlockSpec((tb, tn, nde), lambda bi, ri: (bi, ri, 0)),
            pl.BlockSpec((tb, 1, nde), lambda bi, ri: (bi, 0, 0)),
            pl.BlockSpec((tb, 1, 1), lambda bi, ri: (bi, 0, 0)),
            pl.BlockSpec((nde, de), lambda bi, ri: (0, 0)),
            pl.BlockSpec((4, de, dx_pad), lambda bi, ri: (0, 0, 0)),
            pl.BlockSpec((1, dx_pad), lambda bi, ri: (0, 0)),
        ],
        out_specs=pl.BlockSpec((tb, tn, dx_pad), lambda bi, ri: (bi, ri, 0)),
    )

    out = pl.pallas_call(
        _etox_kernel,
        out_shape=jax.ShapeDtypeStruct((bs, n, dx_pad), jnp.float32),
        grid_spec=grid_spec,
        compiler_params=pltpu.CompilerParams(
            dimension_semantics=("parallel", "parallel"),
            vmem_limit_bytes=vmem_limit,
        ),
    )(Ef, maskflat, inv_cnt, sel, w4, b2)

    # For tiny dx the padded f32 write + this slice costs some extra output
    # bandwidth; callers that can fuse downstream may take the padded slab.
    return out[:, :, :dx]


def etox_reference(E, e_mask2, w, b):
    """Pure-JAX mirror of the PyTorch module (w in PyTorch (dx, 4*de) layout)."""
    bs, n, _, de = E.shape
    mask = jnp.broadcast_to(e_mask2, (bs, n, n, de)).astype(jnp.float32)
    imask = 1.0 - mask
    denom = jnp.sum(mask, axis=2)
    m = jnp.sum(E, axis=2) / denom
    mi = jnp.min(E + 100000.0 * imask, axis=2)
    ma = jnp.max(E - 100000.0 * imask, axis=2)
    std = jnp.sum((E - m[:, :, None, :]) ** 2 * mask, axis=2) / denom
    z = jnp.concatenate((m, mi, ma, std), axis=2)
    return z @ w.T + b


if __name__ == "__main__":
    key = jax.random.PRNGKey(0)

    # Two small configs: one "nice" shape and one with odd n / small de / odd dx
    # to exercise the fold carry and padding paths.
    for (bs, n, de, dx) in [(2, 8, 8, 16), (3, 12, 4, 10)]:
        k_e, k_m, k_w, k_b, key = jax.random.split(key, 5)

        E = jax.random.normal(k_e, (bs, n, n, de), dtype=jnp.float32)

        # edge mask: (bs, 1, n, 1), at least one valid entry per batch to avoid 0/0
        mask = (jax.random.uniform(k_m, (bs, 1, n, 1)) > 0.3).astype(jnp.float32)
        mask = mask.at[:, :, 0, :].set(1.0)

        # PyTorch-layout linear parameters: weight (dx, 4*de), bias (dx,)
        w = jax.random.normal(k_w, (dx, 4 * de), dtype=jnp.float32) * 0.1
        b = jax.random.normal(k_b, (dx,), dtype=jnp.float32) * 0.1

        out = etox_pallas(E, mask, w, b)
        jax.block_until_ready(out)

        ref = etox_reference(E, mask, w, b)
        assert out.shape == (bs, n, dx), out.shape
        err = float(jnp.max(jnp.abs(out - ref)))
        assert jnp.allclose(out, ref, atol=2e-4, rtol=2e-4), (
            f"mismatch vs reference: {err} at config {(bs, n, de, dx)}")

    print("KERNEL_OK")
</pallas_src>

<mosaic_0001>
module attributes {stable_mosaic.version = 11 : i64} {
  func.func @_etox_kernel(%arg0: i32, %arg1: i32, %arg2: memref<1x8x64xf32, #tpu.memory_space<vmem>>, %arg3: memref<1x1x64xf32, #tpu.memory_space<vmem>>, %arg4: memref<1x1x1xf32, #tpu.memory_space<vmem>>, %arg5: memref<64x8xf32, #tpu.memory_space<vmem>>, %arg6: memref<4x8x128xf32, #tpu.memory_space<vmem>>, %arg7: memref<1x128xf32, #tpu.memory_space<vmem>>, %arg8: memref<1x8x128xf32, #tpu.memory_space<vmem>>) attributes {dimension_semantics = [#tpu.dimension_semantics<parallel>, #tpu.dimension_semantics<parallel>], iteration_bounds = array<i64: 2, 1>, scalar_prefetch = 0 : i64, scratch_operands = 0 : i64, tpu.core_type = #tpu.core_type<tc>, window_params = [{transform_indices = @transform_0, window_bounds = array<i64: 1, 8, 64>}, {transform_indices = @transform_1, window_bounds = array<i64: 1, 1, 64>}, {transform_indices = @transform_2, window_bounds = array<i64: 1, 1, 1>}, {pipeline_mode = #tpu.pipeline_mode<synchronous>, transform_indices = @transform_3, window_bounds = array<i64: 64, 8>}, {pipeline_mode = #tpu.pipeline_mode<synchronous>, transform_indices = @transform_4, window_bounds = array<i64: 4, 8, 128>}, {pipeline_mode = #tpu.pipeline_mode<synchronous>, transform_indices = @transform_5, window_bounds = array<i64: 1, 128>}, {transform_indices = @transform_6, window_bounds = array<i64: 1, 8, 128>}]} {
    %c0 = arith.constant 0 : index
    %c0_0 = arith.constant 0 : index
    %0 = vector.load %arg5[%c0, %c0_0] : memref<64x8xf32, #tpu.memory_space<vmem>>, vector<64x8xf32>
    %c0_1 = arith.constant 0 : index
    %c0_2 = arith.constant 0 : index
    %1 = vector.load %arg7[%c0_1, %c0_2] : memref<1x128xf32, #tpu.memory_space<vmem>>, vector<1x128xf32>
    %c0_3 = arith.constant 0 : index
    %c0_4 = arith.constant 0 : index
    %c0_5 = arith.constant 0 : index
    %2 = vector.load %arg6[%c0_3, %c0_4, %c0_5] : memref<4x8x128xf32, #tpu.memory_space<vmem>>, vector<1x8x128xf32>
    %3 = vector.shape_cast %2 : vector<1x8x128xf32> to vector<8x128xf32>
    %c1 = arith.constant 1 : index
    %c0_6 = arith.constant 0 : index
    %c0_7 = arith.constant 0 : index
    %4 = vector.load %arg6[%c1, %c0_6, %c0_7] : memref<4x8x128xf32, #tpu.memory_space<vmem>>, vector<1x8x128xf32>
    %5 = vector.shape_cast %4 : vector<1x8x128xf32> to vector<8x128xf32>
    %c2 = arith.constant 2 : index
    %c0_8 = arith.constant 0 : index
    %c0_9 = arith.constant 0 : index
    %6 = vector.load %arg6[%c2, %c0_8, %c0_9] : memref<4x8x128xf32, #tpu.memory_space<vmem>>, vector<1x8x128xf32>
    %7 = vector.shape_cast %6 : vector<1x8x128xf32> to vector<8x128xf32>
    %c3 = arith.constant 3 : index
    %c0_10 = arith.constant 0 : index
    %c0_11 = arith.constant 0 : index
    %8 = vector.load %arg6[%c3, %c0_10, %c0_11] : memref<4x8x128xf32, #tpu.memory_space<vmem>>, vector<1x8x128xf32>
    %9 = vector.shape_cast %8 : vector<1x8x128xf32> to vector<8x128xf32>
    %c0_12 = arith.constant 0 : index
    %c0_13 = arith.constant 0 : index
    %c0_14 = arith.constant 0 : index
    %10 = vector.load %arg2[%c0_12, %c0_13, %c0_14] : memref<1x8x64xf32, #tpu.memory_space<vmem>>, vector<1x8x64xf32>
    %11 = vector.shape_cast %10 : vector<1x8x64xf32> to vector<8x64xf32>
    %c0_15 = arith.constant 0 : index
    %c0_16 = arith.constant 0 : index
    %c0_17 = arith.constant 0 : index
    %12 = vector.load %arg3[%c0_15, %c0_16, %c0_17] : memref<1x1x64xf32, #tpu.memory_space<vmem>>, vector<1x1x64xf32>
    %13 = vector.shape_cast %12 : vector<1x1x64xf32> to vector<1x64xf32>
    %c0_18 = arith.constant 0 : index
    %c0_19 = arith.constant 0 : index
    %c0_20 = arith.constant 0 : index
    %14 = vector.load %arg4[%c0_18, %c0_19, %c0_20] : memref<1x1x1xf32, #tpu.memory_space<vmem>>, vector<1x1x1xf32>
    %15 = vector.shape_cast %14 : vector<1x1x1xf32> to vector<1x1xf32>
    %16 = vector.broadcast %13 : vector<1x64xf32> to vector<8x64xf32>
    %17 = arith.mulf %11, %16 : vector<8x64xf32>
    %cst = arith.constant dense<0.000000e+00> : vector<8x8xf32>
    %18 = tpu.matmul %11, %0, %cst {dimension_numbers = #tpu.dot_dimension_numbers<[1], [0], [0], [1], [0, 0, 1, 1], [], []>} : vector<8x64xf32>, vector<64x8xf32>, vector<8x8xf32> -> vector<8x8xf32>
    %cst_21 = arith.constant dense<0.000000e+00> : vector<8x8xf32>
    %19 = tpu.matmul %17, %0, %cst_21 {dimension_numbers = #tpu.dot_dimension_numbers<[1], [0], [0], [1], [0, 0, 1, 1], [], []>} : vector<8x64xf32>, vector<64x8xf32>, vector<8x8xf32> -> vector<8x8xf32>
    %20 = arith.mulf %11, %17 : vector<8x64xf32>
    %cst_22 = arith.constant dense<0.000000e+00> : vector<8x8xf32>
    %21 = tpu.matmul %20, %0, %cst_22 {dimension_numbers = #tpu.dot_dimension_numbers<[1], [0], [0], [1], [0, 0, 1, 1], [], []>} : vector<8x64xf32>, vector<64x8xf32>, vector<8x8xf32> -> vector<8x8xf32>
    %22 = vector.broadcast %15 : vector<1x1xf32> to vector<8x8xf32>
    %23 = arith.mulf %18, %22 : vector<8x8xf32>
    %24 = vector.broadcast %15 : vector<1x1xf32> to vector<8x8xf32>
    %25 = arith.mulf %21, %24 : vector<8x8xf32>
    %cst_23 = arith.constant 2.000000e+00 : f32
    %26 = vector.broadcast %cst_23 : f32 to vector<8x8xf32>
    %27 = arith.mulf %26, %23 : vector<8x8xf32>
    %28 = vector.broadcast %15 : vector<1x1xf32> to vector<8x8xf32>
    %29 = arith.mulf %19, %28 : vector<8x8xf32>
    %30 = arith.mulf %27, %29 : vector<8x8xf32>
    %31 = arith.subf %25, %30 : vector<8x8xf32>
    %32 = arith.mulf %23, %23 : vector<8x8xf32>
    %33 = arith.addf %31, %32 : vector<8x8xf32>
    %cst_24 = arith.constant 1.000000e+00 : f32
    %34 = vector.broadcast %cst_24 : f32 to vector<1x64xf32>
    %35 = arith.subf %34, %13 : vector<1x64xf32>
    %cst_25 = arith.constant 1.000000e+05 : f32
    %36 = vector.broadcast %cst_25 : f32 to vector<1x64xf32>
    %37 = arith.mulf %36, %35 : vector<1x64xf32>
    %38 = vector.broadcast %37 : vector<1x64xf32> to vector<8x64xf32>
    %39 = arith.addf %11, %38 : vector<8x64xf32>
    %40 = vector.extract_strided_slice %39 {offsets = [0, 0], sizes = [8, 32], strides = [1, 1]} : vector<8x64xf32> to vector<8x32xf32>
    %41 = vector.extract_strided_slice %39 {offsets = [0, 32], sizes = [8, 32], strides = [1, 1]} : vector<8x64xf32> to vector<8x32xf32>
    %42 = arith.minimumf %40, %41 : vector<8x32xf32>
    %43 = vector.extract_strided_slice %42 {offsets = [0, 0], sizes = [8, 16], strides = [1, 1]} : vector<8x32xf32> to vector<8x16xf32>
    %44 = vector.extract_strided_slice %42 {offsets = [0, 16], sizes = [8, 16], strides = [1, 1]} : vector<8x32xf32> to vector<8x16xf32>
    %45 = arith.minimumf %43, %44 : vector<8x16xf32>
    %46 = vector.extract_strided_slice %45 {offsets = [0, 0], sizes = [8, 8], strides = [1, 1]} : vector<8x16xf32> to vector<8x8xf32>
    %47 = vector.extract_strided_slice %45 {offsets = [0, 8], sizes = [8, 8], strides = [1, 1]} : vector<8x16xf32> to vector<8x8xf32>
    %48 = arith.minimumf %46, %47 : vector<8x8xf32>
    %49 = vector.broadcast %37 : vector<1x64xf32> to vector<8x64xf32>
    %50 = arith.subf %11, %49 : vector<8x64xf32>
    %51 = vector.extract_strided_slice %50 {offsets = [0, 0], sizes = [8, 32], strides = [1, 1]} : vector<8x64xf32> to vector<8x32xf32>
    %52 = vector.extract_strided_slice %50 {offsets = [0, 32], sizes = [8, 32], strides = [1, 1]} : vector<8x64xf32> to vector<8x32xf32>
    %53 = arith.maximumf %51, %52 : vector<8x32xf32>
    %54 = vector.extract_strided_slice %53 {offsets = [0, 0], sizes = [8, 16], strides = [1, 1]} : vector<8x32xf32> to vector<8x16xf32>
    %55 = vector.extract_strided_slice %53 {offsets = [0, 16], sizes = [8, 16], strides = [1, 1]} : vector<8x32xf32> to vector<8x16xf32>
    %56 = arith.maximumf %54, %55 : vector<8x16xf32>
    %57 = vector.extract_strided_slice %56 {offsets = [0, 0], sizes = [8, 8], strides = [1, 1]} : vector<8x16xf32> to vector<8x8xf32>
    %58 = vector.extract_strided_slice %56 {offsets = [0, 8], sizes = [8, 8], strides = [1, 1]} : vector<8x16xf32> to vector<8x8xf32>
    %59 = arith.maximumf %57, %58 : vector<8x8xf32>
    %cst_26 = arith.constant dense<0.000000e+00> : vector<8x128xf32>
    %60 = tpu.matmul %23, %3, %cst_26 {dimension_numbers = #tpu.dot_dimension_numbers<[1], [0], [0], [1], [0, 0, 1, 1], [], []>} : vector<8x8xf32>, vector<8x128xf32>, vector<8x128xf32> -> vector<8x128xf32>
    %cst_27 = arith.constant dense<0.000000e+00> : vector<8x128xf32>
    %61 = tpu.matmul %48, %5, %cst_27 {dimension_numbers = #tpu.dot_dimension_numbers<[1], [0], [0], [1], [0, 0, 1, 1], [], []>} : vector<8x8xf32>, vector<8x128xf32>, vector<8x128xf32> -> vector<8x128xf32>
    %62 = arith.addf %60, %61 : vector<8x128xf32>
    %cst_28 = arith.constant dense<0.000000e+00> : vector<8x128xf32>
    %63 = tpu.matmul %59, %7, %cst_28 {dimension_numbers = #tpu.dot_dimension_numbers<[1], [0], [0], [1], [0, 0, 1, 1], [], []>} : vector<8x8xf32>, vector<8x128xf32>, vector<8x128xf32> -> vector<8x128xf32>
    %64 = arith.addf %62, %63 : vector<8x128xf32>
    %cst_29 = arith.constant dense<0.000000e+00> : vector<8x128xf32>
    %65 = tpu.matmul %33, %9, %cst_29 {dimension_numbers = #tpu.dot_dimension_numbers<[1], [0], [0], [1], [0, 0, 1, 1], [], []>} : vector<8x8xf32>, vector<8x128xf32>, vector<8x128xf32> -> vector<8x128xf32>
    %66 = arith.addf %64, %65 : vector<8x128xf32>
    %67 = vector.broadcast %1 : vector<1x128xf32> to vector<8x128xf32>
    %68 = arith.addf %66, %67 : vector<8x128xf32>
    %c0_30 = arith.constant 0 : index
    %c0_31 = arith.constant 0 : index
    %c0_32 = arith.constant 0 : index
    %69 = vector.load %arg8[%c0_30, %c0_31, %c0_32] : memref<1x8x128xf32, #tpu.memory_space<vmem>>, vector<1x8x128xf32>
    %70 = vector.shape_cast %69 : vector<1x8x128xf32> to vector<8x128xf32>
    %71 = vector.shape_cast %68 : vector<8x128xf32> to vector<1x8x128xf32>
    tpu.vector_store %arg8[%c0_30, %c0_31, %c0_32], %71 {strides = array<i32>} : memref<1x8x128xf32, #tpu.memory_space<vmem>>, vector<1x8x128xf32>,
    return
  }
  func.func @transform_0(%arg0: i32, %arg1: i32) -> (i32, i32, i32) {
    %c0_i32 = arith.constant 0 : i32
    %c0_i32_0 = arith.constant 0 : i32
    return %arg0, %arg1, %c0_i32 : i32, i32, i32
  }
  func.func @transform_1(%arg0: i32, %arg1: i32) -> (i32, i32, i32) {
    %c0_i32 = arith.constant 0 : i32
    %c0_i32_0 = arith.constant 0 : i32
    %c0_i32_1 = arith.constant 0 : i32
    return %arg0, %c0_i32, %c0_i32_0 : i32, i32, i32
  }
  func.func @transform_2(%arg0: i32, %arg1: i32) -> (i32, i32, i32) {
    %c0_i32 = arith.constant 0 : i32
    %c0_i32_0 = arith.constant 0 : i32
    %c0_i32_1 = arith.constant 0 : i32
    return %arg0, %c0_i32, %c0_i32_0 : i32, i32, i32
  }
  func.func @transform_3(%arg0: i32, %arg1: i32) -> (i32, i32) {
    %c0_i32 = arith.constant 0 : i32
    %c0_i32_0 = arith.constant 0 : i32
    %c0_i32_1 = arith.constant 0 : i32
    return %c0_i32, %c0_i32_0 : i32, i32
  }
  func.func @transform_4(%arg0: i32, %arg1: i32) -> (i32, i32, i32) {
    %c0_i32 = arith.constant 0 : i32
    %c0_i32_0 = arith.constant 0 : i32
    %c0_i32_1 = arith.constant 0 : i32
    %c0_i32_2 = arith.constant 0 : i32
    return %c0_i32, %c0_i32_0, %c0_i32_1 : i32, i32, i32
  }
  func.func @transform_5(%arg0: i32, %arg1: i32) -> (i32, i32) {
    %c0_i32 = arith.constant 0 : i32
    %c0_i32_0 = arith.constant 0 : i32
    %c0_i32_1 = arith.constant 0 : i32
    return %c0_i32, %c0_i32_0 : i32, i32
  }
  func.func @transform_6(%arg0: i32, %arg1: i32) -> (i32, i32, i32) {
    %c0_i32 = arith.constant 0 : i32
    %c0_i32_0 = arith.constant 0 : i32
    return %arg0, %arg1, %c0_i32 : i32, i32, i32
  }
}

</mosaic_0001>

<bundles_post_ra>
// kernel: tpu_custom_call.1
= control target key start
LH: loop header
LB: loop body
LE: loop exit
PB: predicated region body
PF: predicated region fallthrough
CT: control target
= control target key end

     0   :  { %11 = vsyncpa [#allocation3], 0  ;;  %s1006_s0 = inlined_call_operand.vmem [shape: f32[2,8,64], index: 0, kind: input, shape index: {}]   ;;  %s1007_s1 = inlined_call_operand.vmem [shape: f32[2,1,64], index: 1, kind: input, shape index: {}]   ;;  %s1008_s2 = inlined_call_operand.vmem [shape: f32[2,1,1], index: 2, kind: input, shape index: {}]   ;;  %s1009_s3 = inlined_call_operand.vmem [shape: f32[64,8], index: 3, kind: input, shape index: {}]   ;;  %s1010_s4 = inlined_call_operand.vmem [shape: f32[4,8,128], index: 4, kind: input, shape index: {}]   ;;  %s1011_s5 = inlined_call_operand.vmem [shape: f32[1,128], index: 5, kind: input, shape index: {}]   ;;  %s1012_s6 = inlined_call_operand.hbm [shape: f32[2,8,128], index: 6, kind: output, shape index: {}]  }
   0x1   :  { %13 = vsyncpa [#allocation3 + $0x1], 0  ;;  %s855_s21 = smov 0   ;;  %s857_s22 = smov 0  }
   0x2   :  { %s859_s23 = smov 0   ;;  %s861_s24 = smov 0  }
   0x3   :  { %s863_s25 = smov 0   ;;  %s865_s26 = smov 0  }
   0x4 LB: > { %s651_s27 = sadd.s32 4294967295, %s814_s26   ;;  %s652_s28 = sadd.s32 4294967294, %s814_s26   ;;  %s814_s26 = sphi %s865_s26, %s19_s26   ;;  %s810_s25 = sphi %s863_s25, %s1019_s25   ;;  %s806_s24 = sphi %s861_s24, %s1018_s24   ;;  %s802_s23 = sphi %s859_s23, %s1017_s23   ;;  %s798_s22 = sphi %s857_s22, %s1016_s22   ;;  %s794_s21 = sphi %s855_s21, %s1015_s21  }
   0x5   : > { %s31_s29 = sadd.s32 1, %s810_s25  ;;  %s183_s30 = sadd.s32 1, %s802_s23 }
   0x6   : > { %p33_p0 = scmp.ge.s32.totalorder %s31_s29, 2  ;;  %p193_p1 = scmp.ne.s32.totalorder %s802_s23, %s798_s22 }
   0x7   : > { %p194_p2 = scmp.eq.s32.totalorder %s651_s27, 1  ;;  %p199_p3 = scmp.ne.s32.totalorder %s798_s22, %s794_s21 }
   0x8   : > { %s1021_s29 = smov (%p33_p0, %s31_s29), 0  ;;  %p200_p5 = scmp.eq.s32.totalorder %s652_s28, 1 }
   0x9   : > { %p895_p4 = por %p194_p2, %p193_p1  ;;  %s178_s8 = ssub.s32 %s810_s25, %s1021_s29 }
   0xa   : > { %p655_p6 = scmp.ge.s32.totalorder %s814_s26, 1  ;;  %p181_p7 = scmp.eq.s32.totalorder %s178_s8, 0 }
   0xb   : > { %p902_p8 = por %p200_p5, %p199_p3  ;;  %p249_p9 = scmp.lt.s32.totalorder %s814_s26, 3 }
   0xc   : > { %s908_s10 = scalar_select %p181_p7, %s802_s23, %s183_s30  }
   0xd   : > { %p250_p10 = pnand %p655_p6, %p249_p9 }
   0xe   : > { %p287_p11 = scmp.lt.s32.totalorder (!%p250_p10), %s806_s24, 1  ;;  %s816_s19 = smov (!%p250_p10), 96  }
   0xf   : > { %253 = sbr.rel (%p250_p10) target bundleno = 532 (0x214), region = 44  ;;  %s817_s13 = smov (!%p250_p10), 112  }
  0x10   : > { %s819_s14 = smov (!%p250_p10), 120   ;;  %s284_s28 = sand.u32 (!%p250_p10), 1, %s798_s22  }
  0x11   : > { %s656_s30 = sshll.u32 (!%p250_p10), %s284_s28, 3  ;;  %s669_s8 = sshll.u32 (!%p250_p10), %s806_s24, 3 }
  0x12   : > { %s286_s17 = scalar_lea.vmem (!%p250_p10), [#allocation2], %s656_s30 }
  0x14   : > { %s912_s11 = scalar_select %p287_p11, %s806_s24, 1  ;;  %v307_v7 = vld [vmem:[%s1009_s3 + $0x38] sm:$0xff]  ;;  %v306_v8 = vld [vmem:[%s1009_s3 + $0x30] sm:$0xff]  ;;  %v305_v9 = vld [vmem:[%s1009_s3 + $0x28] sm:$0xff]  ;;  %vm323_vm0 = vcmask 523264   ;;  %v818_v22 = vmov 0  }
  0x15   : > { %335 = vmatpush.msra.mxu0 %v307_v7  ;;  %382 = vmatpush.msra.mxu2 %v307_v7  ;;  %v304_v11 = vld [vmem:[%s1009_s3 + $0x20] sm:$0xff]  ;;  %v303_v12 = vld [vmem:[%s1009_s3 + $0x18] sm:$0xff]  ;;  %v302_v13 = vld [vmem:[%s1009_s3 + $0x10] sm:$0xff]  ;;  %vm445_vm1 = vcmask 64512   ;;  %s546_s24 = scalar_lea.sflag [#allocation3], %s284_s28 }
  0x16   : > { %s657_s12 = sshll.u32 %s912_s11, 3  ;;  %s296_s15 = scalar_lea.vmem %s1007_s1, %s912_s11  ;;  %358 = vmatpush.msra.mxu1 %v307_v7  ;;  %v301_v15 = vld [vmem:[%s1009_s3 + $0x8] sm:$0xff]  ;;  %v300_v16 = vld [vmem:[%s1009_s3] sm:$0xff]  ;;  %731 = vset.pattern.permute.xlu2 %v818_v22  ;;  %v660_v30 = vld [vmem:[%s1010_s4 + $0x18] sm:$0xff] }
  0x17   : > { %v317_v0 = vld [vmem:[%s296_s15] sm:$0x1]  ;;  %s293_s18 = scalar_lea.vmem %s1006_s0, %s657_s12  ;;  %336 = vmatpush.msra.mxu0 %v306_v8  ;;  %383 = vmatpush.msra.mxu2 %v306_v8  ;;  %s299_s12 = scalar_lea.vmem %s1008_s2, %s912_s11  ;;  %v658_v28 = vld [vmem:[%s1010_s4 + $0x8] sm:$0xff]  ;;  %v659_v33 = vld [vmem:[%s1010_s4 + $0x10] sm:$0xff] }
  0x18   : > { %v408_v1 = vsub.f32 1.0, %v317_v0  ;;  %v316_v3 = vld [vmem:[%s293_s18] sm:$0xff]  ;;  %359 = vmatpush.msra.mxu1 %v306_v8  ;;  %732 = vset.pattern.permute.xlu0 %v818_v22  ;;  %s559_s18 = sshll.u32 %s286_s17, 4  ;;  %s560_s18 = int_to_ptr.vmem [resolvable:$true] %s559_s18 }
  0x19   : > { %v733_v10 = vld [vmem:[%s296_s15] ss:$0 sm:$0xff]  ;;  %337 = vmatpush.msra.mxu0 %v305_v9  ;;  %384 = vmatpush.msra.mxu2 %v305_v9 }
  0x1a   : > { %v409_v2 = vmul.f32 100000.0, %v408_v1  ;;  %360 = vmatpush.msra.mxu1 %v305_v9  ;;  %v322_v14 = vmul.f32 %v733_v10, %v316_v3  ;;  %v734_v25 = vld [vmem:[%s299_s12] ss:$0 sm:$0xff]  ;;  %464 = vmatpush.msra.mxu3 %v658_v28  ;;  %s756_s12 = scalar_lea.hbm %s1012_s6, 16 }
  0x1b   : > { %338 = vmatpush.msra.mxu0 %v304_v11  ;;  %385 = vmatpush.msra.mxu2 %v304_v11  ;;  %v309_v29 = vld [vmem:[%s1010_s4] sm:$0xff] }
  0x1c   : > { %v411_v4 = vperm.slane %v409_v2, 0  ;;  %361 = vmatpush.msra.mxu1 %v304_v11  ;;  %v370_v17 = vmul.f32 %v322_v14, %v316_v3  ;;  %487 = vmatpush.msrb.mxu3 %v309_v29  ;;  %v735_v53 = vld [vmem:[%s1011_s5] ss:$0 sm:$0xff] }
  0x1d   : > { %339 = vmatpush.msra.mxu0 %v303_v12  ;;  %386 = vmatpush.msra.mxu2 %v303_v12 }
  0x1e   : > { %v413_v5 = vadd.f32 %v411_v4, %v316_v3  ;;  %v429_v6 = vsub.f32 %v316_v3, %v411_v4  ;;  %362 = vmatpush.msra.mxu1 %v303_v12 }
  0x1f   : > { %340 = vmatpush.msra.mxu0 %v302_v13  ;;  %387 = vmatpush.msra.mxu2 %v302_v13 }
  0x20   : > { %415 = vrot.lane.b32.xlu0 %v413_v5, %s816_s19  ;;  %363 = vmatpush.msra.mxu1 %v302_v13 }
  0x21   : > { %341 = vmatpush.msra.mxu0 %v301_v15  ;;  %388 = vmatpush.msra.mxu2 %v301_v15 }
  0x22   : > { %364 = vmatpush.msra.mxu1 %v301_v15 }
  0x23   : > { %342 = vmatpush.msra.mxu0 %v300_v16  ;;  %389 = vmatpush.msra.mxu2 %v300_v16 }
  0x24   : > { %661 = vmatmul.msk.f32.vlgmr.msra.gmra.mxu0 %vm323_vm0, %v316_v3  ;;  %663 = vmatmul.msk.f32.vlgmr.msra.gmra.mxu2 %vm323_vm0, %v370_v17 }
  0x25   : > { %365 = vmatpush.msra.mxu1 %v300_v16  ;;  %534 = vmatpush.msrb.mxu0 %v660_v30 }
  0x26   : > { %662 = vmatmul.msk.f32.vlgmr.msra.gmra.mxu1 %vm323_vm0, %v322_v14 }
  0x28   : > { %431 = vrot.lane.b32.xlu0 %v429_v6, %s816_s19 }
  0x92   : > { %v416_v18 = vpop.permute.xlu0 %415 }
  0x93   : > { %v418_v19 = vmin.f32 %v413_v5, %v416_v18 }
  0x95   : > { %420 = vrot.lane.b32.xlu1 %v418_v19, %s817_s13 }
  0x9a   : > { %v432_v20 = vpop.permute.xlu0 %431 }
  0x9b   : > { %v434_v21 = vmax.f32 %v429_v6, %v432_v20 }
  0x9d   : > { %436 = vrot.lane.b32.xlu1 %v434_v21, %s817_s13 }
  0xa1   : > { %v344_v34 = vpop.f32.mrf.mxu0 }
  0xa3   : > { %v367_v35 = vpop.f32.mrf.mxu1 }
  0xa7   : > { %v391_v37 = vpop.f32.mrf.mxu2 }
 0x107   : > { %v421_v23 = vpop.permute.xlu1 %420 }
 0x108   : > { %v423_v24 = vmin.f32 %v418_v19, %v421_v23 }
 0x10a   : > { %425 = vrot.lane.b32.xlu2 %v423_v24, %s819_s14 }
 0x10f   : > { %v437_v26 = vpop.permute.xlu1 %436 }
 0x110   : > { %v439_v27 = vmax.f32 %v434_v21, %v437_v26 }
 0x112   : > { %397 = vperm.xlu2 %731, %v734_v25   ;;  %441 = vrot.lane.b32.xlu0 %v439_v27, %s819_s14  ;;  %s557_s14 = scalar_lea.hbm %s1012_s6, %s669_s8 }
 0x113   : > { %s561_s19 = sshll.u32 %s557_s14, 4  ;;  %s562_s19 = int_to_ptr.hbm [resolvable:$true] %s561_s19 }
 0x114   : > { %s750_s15 = sshra.s32 %s562_s19, 4  ;;  %s751_s15 = int_to_ptr.hbm [resolvable:$true] %s750_s15 }
 0x115   : > { %s752_s20 = scalar_lea.hbm %s751_s15, 8  ;;  %p757_p1 = scmp.lt.s32.totalorder %s751_s15, %s1012_s6 }
 0x116   : > { %p753_p12 = scmp.ne.s32.totalorder %s751_s15, %s752_s20  ;;  %p758_p2 = scmp.lt.s32.totalorder %s756_s12, %s752_s20 }
 0x118   : > { %p754_p13 = pnand %p753_p12, %p895_p4  ;;  %p759_p3 = por %p758_p2, %p757_p1 }
 0x11a   : > { %p755_p0 = pneg %p754_p13 }
 0x11c   : > { %p760_p5 = pnand %p759_p3, %p755_p0 }
 0x164   : > { %v426_v31 = vpop.permute.xlu2 %425 }
 0x165   : > { %v428_v32 = vmin.f32 %v423_v24, %v426_v31 }
 0x167   : > { %664 = vmatmul.msk.f32.vlgmr.msra.gmra.mxu3 %vm445_vm1, %v428_v32 }
 0x168   : > { %510 = vmatpush.msra.mxu3 %v659_v33 }
 0x16c   : > { %v398_v36 = vpop.permute.xlu2 %397 }
 0x16d   : > { %v400_v38 = vmul.f32 %v398_v36, %v344_v34  ;;  %v403_v39 = vmul.f32 %v398_v36, %v367_v35  ;;  %v401_v41 = vmul.f32 %v398_v36, %v391_v37 }
 0x16f   : > { %665 = vmatmul.msk.f32.vlgmr.msrb.gmra.mxu3 %vm445_vm1, %v400_v38  ;;  %v402_v40 = vmul.f32 2.0, %v400_v38  ;;  %v406_v42 = vmul.f32 %v400_v38, %v400_v38 }
 0x171   : > { %v404_v43 = vmul.f32 %v403_v39, %v402_v40 }
 0x173   : > { %v405_v44 = vsub.f32 %v401_v41, %v404_v43 }
 0x175   : > { %v407_v45 = vadd.f32 %v406_v42, %v405_v44 }
 0x177   : > { %667 = vmatmul.msk.f32.vlgmr.msrb.gmra.mxu0 %vm445_vm1, %v407_v45 }
 0x184   : > { %v442_v46 = vpop.permute.xlu0 %441 }
 0x185   : > { %v444_v47 = vmax.f32 %v439_v27, %v442_v46 }
 0x187   : > { %666 = vmatmul.msk.f32.vlgmr.msra.gmra.mxu3 %vm445_vm1, %v444_v47 }
 0x1ea   : > { %v466_v48 = vpop.f32.mrf.mxu3 }
 0x1f2   : > { %v489_v49 = vpop.f32.mrf.mxu3 }
 0x1f3   : > { %v490_v50 = vadd.f32 %v489_v49, %v466_v48 }
 0x1f4   : > { %v536_v54 = vpop.f32.mrf.mxu0 }
 0x20a   : > { %v512_v51 = vpop.f32.mrf.mxu3 }
 0x20b   : > { %v515_v52 = vadd.f32 %v512_v51, %v490_v50 }
 0x20d   : > { %v539_v55 = vadd.f32 %v536_v54, %v515_v52 }
 0x20f   : > { %v543_v56 = vadd.f32 %v735_v53, %v539_v55 }
 0x211   : > { %544 = vst [vmem:[%s286_s17] sm:$0xff] %v543_v56 }
 0x212   : > { %763 = shalt.err (!%p760_p5)
}
 0x213   : > { %672 = dma.vmem_to_hbm [thread:$0]  (%p895_p4), %s560_s18, 128, %s562_s19, %s546_s24  }
 0x214 PF: > { %p678_p6 = scmp.ge.s32.totalorder %s814_s26, 2  ;;  %s573_s28 = sand.u32 1, %s794_s21  }
 0x215   : > { %s574_s14 = scalar_lea.sflag [#allocation3], %s573_s28 }
 0x216   : > { %p675_p7 = pnand %p678_p6, %p902_p8 }
 0x218   : > { %p676_p9 = pneg %p675_p7 }
 0x21a   : > { %789 = dma.done.wait (%p676_p9), %s574_s14, 128  }
 0x21b   : > { %791 = vsyncadd (%p676_p9), %s574_s14, 4294967168  ;;  %s19_s26 = sadd.s32 1, %s814_s26   ;;  %s1015_s21 = smov %s798_s22 }
 0x21c   : > { %p16_p10 = scmp.ge.s32.totalorder %s19_s26, 4   ;;  %s1016_s22 = smov %s802_s23 }
 0x21d   : > { %s1017_s23 = smov %s908_s10  ;;  %s1018_s24 = smov %s810_s25 }
 0x21e   : > { %s1019_s25 = smov %s1021_s29  ;;  %18 = sbr.rel (!%p16_p10) target bundleno = 4 (0x4), region = 88 }
 0x223   :  { %580 = vsyncpa [#allocation3], 1 }
 0x224   :  { %582 = vsyncpa [#allocation3 + $0x1], 1 }

</bundles_post_ra>
